<compile_context>
chip_gen: v5e
topology: v5e:2x2
jax: 0.10.0
libtpu: 0.0.40
codegen_flags: <defaults>
</compile_context>

<pallas_src>
import math

import jax
import jax.numpy as jnp
from jax.experimental import pallas as pl
from jax.experimental.pallas import tpu as pltpu


_INV_SQRT2 = 0.7071067811865475  # 1/sqrt(2); matches F.gelu default (exact erf)


def _geglu_kernel(x_ref, wh_ref, wg_ref, bh_ref, bg_ref, o_ref, h_acc, g_acc):
    # x_ref : (tm, tk)  input row/K tile (compute dtype, e.g. bf16)
    # wh_ref: (tk, tn)  value-path weight tile
    # wg_ref: (tk, tn)  gate-path weight tile
    # bh_ref: (1, tn)   value-path bias tile (f32)
    # bg_ref: (1, tn)   gate-path bias tile (f32)
    # o_ref : (tm, tn)  output tile
    # h_acc, g_acc: (tm, tn) f32 VMEM accumulators
    k = pl.program_id(2)

    @pl.when(k == 0)
    def _():
        h_acc[...] = jnp.zeros_like(h_acc)
        g_acc[...] = jnp.zeros_like(g_acc)

    x = x_ref[...]
    h_acc[...] += jnp.dot(x, wh_ref[...], preferred_element_type=jnp.float32)
    g_acc[...] += jnp.dot(x, wg_ref[...], preferred_element_type=jnp.float32)

    @pl.when(k == pl.num_programs(2) - 1)
    def _():
        g = g_acc[...] + bg_ref[...]
        # Exact (erf) GELU, matching torch.nn.functional.gelu default.
        # TODO(synk): a tanh-approx GELU would move the transcendental to the
        # EUP slot (cheaper epilogue) but changes numerics vs the torch module.
        gelu_g = 0.5 * g * (1.0 + jax.lax.erf(g * _INV_SQRT2))
        o_ref[...] = ((h_acc[...] + bh_ref[...]) * gelu_g).astype(o_ref.dtype)


def _round_up(x, m):
    return (x + m - 1) // m * m


def _choose_tile(dim, cap):
    """Tile size + padded extent for a feature (lane) dimension.

    Prefers a full-dim block (legal when block == array dim; no padding copies,
    important for non-128-multiple dims like SD's dim_in=320).  Otherwise pick
    the largest multiple-of-128 tile <= cap that divides the dim; as a last
    resort pad up to a multiple of cap (zero padding is numerically inert).
    """
    if dim <= cap or dim % 128 != 0:
        return dim, dim
    for cand in range(cap, 127, -128):
        if dim % cand == 0:
            return cand, dim
    return cap, _round_up(dim, cap)


def geglu_prepare(w, b, *, tn=512, tk=512, compute_dtype=jnp.bfloat16):
    """One-time parameter prep (split, cast, pad) — hoisted off the hot path.

    w: (dim_in, 2*dim_out)   (transpose of torch nn.Linear.weight)
    b: (2*dim_out,)
    """
    dim_in, two_dout = w.shape
    dim_out = two_dout // 2

    tk, K_pad = _choose_tile(dim_in, tk)
    tn, N_pad = _choose_tile(dim_out, tn)

    # Value / gate halves in the MXU-native dtype; biases stay f32 (added in
    # the f32 epilogue).
    wh = w[:, :dim_out].astype(compute_dtype)
    wg = w[:, dim_out:].astype(compute_dtype)
    bh = b[:dim_out].astype(jnp.float32).reshape(1, dim_out)
    bg = b[dim_out:].astype(jnp.float32).reshape(1, dim_out)
    if (K_pad, N_pad) != (dim_in, dim_out):
        wh = jnp.pad(wh, ((0, K_pad - dim_in), (0, N_pad - dim_out)))
        wg = jnp.pad(wg, ((0, K_pad - dim_in), (0, N_pad - dim_out)))
        bh = jnp.pad(bh, ((0, 0), (0, N_pad - dim_out)))
        bg = jnp.pad(bg, ((0, 0), (0, N_pad - dim_out)))

    return dict(wh=wh, wg=wg, bh=bh, bg=bg,
                dim_in=dim_in, dim_out=dim_out,
                tk=tk, tn=tn, K_pad=K_pad, N_pad=N_pad,
                compute_dtype=compute_dtype)


def geglu_apply(x, params, *, tm=512):
    """GEGLU forward: x (..., dim_in) -> (..., dim_out)."""
    *lead, dim_in = x.shape
    assert dim_in == params["dim_in"], (dim_in, params["dim_in"])
    dim_out = params["dim_out"]
    tk, tn = params["tk"], params["tn"]
    K_pad, N_pad = params["K_pad"], params["N_pad"]
    compute_dtype = params["compute_dtype"]
    out_dtype = x.dtype

    M = math.prod(lead) if lead else 1
    tm = min(tm, _round_up(M, 8))
    M_pad = _round_up(M, tm)

    # v7x has 2 TensorCores: make sure at least one "parallel" grid axis has
    # extent >= 2 so the kernel doesn't leave a core idle (no-op on v5e/v6e).
    if M_pad // tm == 1 and N_pad // tn == 1:
        if tm % 16 == 0:
            tm //= 2
            M_pad = _round_up(M, tm)
        elif tn % 256 == 0:
            tn //= 2  # N_pad stays a multiple of the halved tn

    x2d = x.reshape(M, dim_in).astype(compute_dtype)
    if (M_pad, K_pad) != (M, dim_in):
        x2d = jnp.pad(x2d, ((0, M_pad - M), (0, K_pad - dim_in)))

    grid = (M_pad // tm, N_pad // tn, K_pad // tk)

    # Rough VMEM footprint (double-buffered tiles + f32 accumulators) so big
    # tiles don't trip the default scoped-VMEM limit; capped well under v7x's
    # 64 MiB physical VMEM.
    c_isz = jnp.dtype(compute_dtype).itemsize
    o_isz = jnp.dtype(out_dtype).itemsize
    vmem_bytes = (2 * tm * tk * c_isz            # x tile (double-buffered)
                  + 2 * 2 * tk * tn * c_isz      # Wh, Wg tiles
                  + 2 * 2 * 8 * tn * 4           # bias tiles (sublane-padded)
                  + 2 * tm * tn * o_isz          # output tile
                  + 2 * tm * tn * 4)             # f32 accumulators
    vmem_limit = int(min(48 * 1024 * 1024,
                         max(24 * 1024 * 1024, 1.5 * vmem_bytes)))

    out2d = pl.pallas_call(
        _geglu_kernel,
        out_shape=jax.ShapeDtypeStruct((M_pad, N_pad), out_dtype),
        grid_spec=pltpu.PrefetchScalarGridSpec(
            num_scalar_prefetch=0,
            grid=grid,
            in_specs=[
                pl.BlockSpec((tm, tk), lambda i, j, k: (i, k)),   # x
                pl.BlockSpec((tk, tn), lambda i, j, k: (k, j)),   # Wh
                pl.BlockSpec((tk, tn), lambda i, j, k: (k, j)),   # Wg
                pl.BlockSpec((1, tn), lambda i, j, k: (0, j)),    # bh (f32)
                pl.BlockSpec((1, tn), lambda i, j, k: (0, j)),    # bg (f32)
            ],
            out_specs=pl.BlockSpec((tm, tn), lambda i, j, k: (i, j)),
            scratch_shapes=[
                pltpu.VMEM((tm, tn), jnp.float32),  # value accumulator
                pltpu.VMEM((tm, tn), jnp.float32),  # gate accumulator
            ],
        ),
        compiler_params=pltpu.CompilerParams(
            dimension_semantics=("parallel", "parallel", "arbitrary"),
            vmem_limit_bytes=vmem_limit,
        ),
    )(x2d, params["wh"], params["wg"], params["bh"], params["bg"])

    out = out2d[:M, :dim_out]
    return out.reshape(*lead, dim_out) if lead else out.reshape(dim_out)


def geglu(x, w, b, *, tm=512, tn=512, tk=512, compute_dtype=jnp.bfloat16):
    """Convenience wrapper: prepare params + apply in one call.

    In an inference loop, call geglu_prepare once at load time and reuse the
    result with geglu_apply (avoids re-splitting / re-padding the weights).
    """
    params = geglu_prepare(w, b, tn=tn, tk=tk, compute_dtype=compute_dtype)
    return geglu_apply(x, params, tm=tm)


def _reference_geglu(x, w, b, cast_dtype=None):
    """Pure-JAX reference. cast_dtype simulates the kernel's input rounding."""
    if cast_dtype is not None:
        x = x.astype(cast_dtype)
        w = w.astype(cast_dtype)
    y = jnp.einsum("...i,io->...o",
                   x.astype(jnp.float32), w.astype(jnp.float32),
                   precision=jax.lax.Precision.HIGHEST) + b.astype(jnp.float32)
    dim_out = w.shape[1] // 2
    h, g = y[..., :dim_out], y[..., dim_out:]
    return h * (0.5 * g * (1.0 + jax.lax.erf(g * _INV_SQRT2)))


if __name__ == "__main__":
    key = jax.random.PRNGKey(0)

    # --- Test 1: small module-spec shapes (batch=2, seq=8, dim_in=32,
    # dim_out=32); f32 datapath (tight-ish check) and default bf16 datapath. ---
    B, S, dim_in, dim_out = 2, 8, 32, 32
    k1, k2, k3, key = jax.random.split(key, 4)
    x = jax.random.normal(k1, (B, S, dim_in), dtype=jnp.float32)
    # Synthetic parameters (stand-in for nn.Linear init), stored as
    # (dim_in, 2*dim_out) = transpose of torch's (2*dim_out, dim_in).
    w = jax.random.normal(k2, (dim_in, 2 * dim_out), dtype=jnp.float32) * 0.05
    b = jax.random.normal(k3, (2 * dim_out,), dtype=jnp.float32) * 0.05

    out = jax.block_until_ready(geglu(x, w, b, compute_dtype=jnp.float32))
    ref = _reference_geglu(x, w, b)
    assert out.shape == (B, S, dim_out)
    assert jnp.allclose(out, ref, atol=2e-3, rtol=2e-3), "f32 path mismatch"

    out_bf = jax.block_until_ready(geglu(x, w, b))  # default bf16-fed MXU
    ref_bf = _reference_geglu(x, w, b, cast_dtype=jnp.bfloat16)
    assert jnp.allclose(out_bf, ref_bf, atol=2e-2, rtol=2e-2), "bf16 path mismatch"

    # --- Test 2: multi-tile / multi-k accumulation / row pad-and-slice-back
    # (small tiles force grid (4, 3, 2)). ---
    B2, S2, di2, do2 = 2, 25, 256, 384
    k1, k2, k3, key = jax.random.split(key, 4)
    x2 = jax.random.normal(k1, (B2, S2, di2), dtype=jnp.float32)
    w2 = jax.random.normal(k2, (di2, 2 * do2), dtype=jnp.float32) * 0.03
    b2 = jax.random.normal(k3, (2 * do2,), dtype=jnp.float32) * 0.03
    out2 = jax.block_until_ready(
        geglu(x2, w2, b2, tm=16, tn=128, tk=128, compute_dtype=jnp.float32))
    ref2 = _reference_geglu(x2, w2, b2)
    assert out2.shape == (B2, S2, do2)
    assert jnp.allclose(out2, ref2, atol=2e-3, rtol=2e-3), "multi-tile mismatch"

    # --- Test 3: non-multiple-of-128 dim_in (SD uses 320) -> full-K block,
    # default bf16 datapath. ---
    B3, S3, di3, do3 = 2, 8, 320, 64
    k1, k2, k3, key = jax.random.split(key, 4)
    x3 = jax.random.normal(k1, (B3, S3, di3), dtype=jnp.float32)
    w3 = jax.random.normal(k2, (di3, 2 * do3), dtype=jnp.float32) * 0.03
    b3 = jax.random.normal(k3, (2 * do3,), dtype=jnp.float32) * 0.03
    out3 = jax.block_until_ready(geglu(x3, w3, b3))
    ref3 = _reference_geglu(x3, w3, b3, cast_dtype=jnp.bfloat16)
    assert out3.shape == (B3, S3, do3)
    assert jnp.allclose(out3, ref3, atol=3e-2, rtol=3e-2), "non-aligned dim_in mismatch"

    print("KERNEL_OK")
</pallas_src>

<mosaic_0001>
module attributes {stable_mosaic.version = 11 : i64} {
  func.func @_geglu_kernel(%arg0: i32, %arg1: i32, %arg2: i32, %arg3: memref<8x32xf32, #tpu.memory_space<vmem>>, %arg4: memref<32x32xf32, #tpu.memory_space<vmem>>, %arg5: memref<32x32xf32, #tpu.memory_space<vmem>>, %arg6: memref<1x32xf32, #tpu.memory_space<vmem>>, %arg7: memref<1x32xf32, #tpu.memory_space<vmem>>, %arg8: memref<8x32xf32, #tpu.memory_space<vmem>>, %arg9: memref<8x32xf32, #tpu.memory_space<vmem>>, %arg10: memref<8x32xf32, #tpu.memory_space<vmem>>) attributes {dimension_semantics = [#tpu.dimension_semantics<parallel>, #tpu.dimension_semantics<parallel>, #tpu.dimension_semantics<arbitrary>], iteration_bounds = array<i64: 2, 1, 1>, scalar_prefetch = 0 : i64, scratch_operands = 2 : i64, tpu.core_type = #tpu.core_type<tc>, window_params = [{transform_indices = @transform_0, window_bounds = array<i64: 8, 32>}, {transform_indices = @transform_1, window_bounds = array<i64: 32, 32>}, {transform_indices = @transform_2, window_bounds = array<i64: 32, 32>}, {transform_indices = @transform_3, window_bounds = array<i64: 1, 32>}, {transform_indices = @transform_4, window_bounds = array<i64: 1, 32>}, {transform_indices = @transform_5, window_bounds = array<i64: 8, 32>}]} {
    %c0_i32 = arith.constant 0 : i32
    %0 = arith.cmpi eq, %arg2, %c0_i32 : i32
    %1 = arith.extui %0 : i1 to i32
    %c0_i32_0 = arith.constant 0 : i32
    %2 = arith.cmpi ne, %1, %c0_i32_0 : i32
    scf.if %2 {
      %cst_17 = arith.constant 0.000000e+00 : f32
      %17 = vector.broadcast %cst_17 : f32 to vector<8x32xf32>
      %c0_18 = arith.constant 0 : index
      %c0_19 = arith.constant 0 : index
      %18 = vector.load %arg9[%c0_18, %c0_19] : memref<8x32xf32, #tpu.memory_space<vmem>>, vector<8x32xf32>
      tpu.vector_store %arg9[%c0_18, %c0_19], %17 {strides = array<i32>} : memref<8x32xf32, #tpu.memory_space<vmem>>, vector<8x32xf32>,
      %cst_20 = arith.constant 0.000000e+00 : f32
      %19 = vector.broadcast %cst_20 : f32 to vector<8x32xf32>
      %c0_21 = arith.constant 0 : index
      %c0_22 = arith.constant 0 : index
      %20 = vector.load %arg10[%c0_21, %c0_22] : memref<8x32xf32, #tpu.memory_space<vmem>>, vector<8x32xf32>
      tpu.vector_store %arg10[%c0_21, %c0_22], %19 {strides = array<i32>} : memref<8x32xf32, #tpu.memory_space<vmem>>, vector<8x32xf32>,
    } else {
    }
    %c0 = arith.constant 0 : index
    %c0_1 = arith.constant 0 : index
    %3 = vector.load %arg3[%c0, %c0_1] : memref<8x32xf32, #tpu.memory_space<vmem>>, vector<8x32xf32>
    %c0_2 = arith.constant 0 : index
    %c0_3 = arith.constant 0 : index
    %4 = vector.load %arg9[%c0_2, %c0_3] : memref<8x32xf32, #tpu.memory_space<vmem>>, vector<8x32xf32>
    %c0_4 = arith.constant 0 : index
    %c0_5 = arith.constant 0 : index
    %5 = vector.load %arg4[%c0_4, %c0_5] : memref<32x32xf32, #tpu.memory_space<vmem>>, vector<32x32xf32>
    %cst = arith.constant dense<0.000000e+00> : vector<8x32xf32>
    %6 = tpu.matmul %3, %5, %cst {dimension_numbers = #tpu.dot_dimension_numbers<[1], [0], [0], [1], [0, 0, 1, 1], [], []>} : vector<8x32xf32>, vector<32x32xf32>, vector<8x32xf32> -> vector<8x32xf32>
    %7 = arith.addf %4, %6 : vector<8x32xf32>
    %c0_6 = arith.constant 0 : index
    %c0_7 = arith.constant 0 : index
    %8 = vector.load %arg9[%c0_6, %c0_7] : memref<8x32xf32, #tpu.memory_space<vmem>>, vector<8x32xf32>
    tpu.vector_store %arg9[%c0_6, %c0_7], %7 {strides = array<i32>} : memref<8x32xf32, #tpu.memory_space<vmem>>, vector<8x32xf32>,
    %c0_8 = arith.constant 0 : index
    %c0_9 = arith.constant 0 : index
    %9 = vector.load %arg10[%c0_8, %c0_9] : memref<8x32xf32, #tpu.memory_space<vmem>>, vector<8x32xf32>
    %c0_10 = arith.constant 0 : index
    %c0_11 = arith.constant 0 : index
    %10 = vector.load %arg5[%c0_10, %c0_11] : memref<32x32xf32, #tpu.memory_space<vmem>>, vector<32x32xf32>
    %cst_12 = arith.constant dense<0.000000e+00> : vector<8x32xf32>
    %11 = tpu.matmul %3, %10, %cst_12 {dimension_numbers = #tpu.dot_dimension_numbers<[1], [0], [0], [1], [0, 0, 1, 1], [], []>} : vector<8x32xf32>, vector<32x32xf32>, vector<8x32xf32> -> vector<8x32xf32>
    %12 = arith.addf %9, %11 : vector<8x32xf32>
    %c0_13 = arith.constant 0 : index
    %c0_14 = arith.constant 0 : index
    %13 = vector.load %arg10[%c0_13, %c0_14] : memref<8x32xf32, #tpu.memory_space<vmem>>, vector<8x32xf32>
    tpu.vector_store %arg10[%c0_13, %c0_14], %12 {strides = array<i32>} : memref<8x32xf32, #tpu.memory_space<vmem>>, vector<8x32xf32>,
    %c0_i32_15 = arith.constant 0 : i32
    %14 = arith.cmpi eq, %arg2, %c0_i32_15 : i32
    %15 = arith.extui %14 : i1 to i32
    %c0_i32_16 = arith.constant 0 : i32
    %16 = arith.cmpi ne, %15, %c0_i32_16 : i32
    scf.if %16 {
      %c0_17 = arith.constant 0 : index
      %c0_18 = arith.constant 0 : index
      %17 = vector.load %arg10[%c0_17, %c0_18] : memref<8x32xf32, #tpu.memory_space<vmem>>, vector<8x32xf32>
      %c0_19 = arith.constant 0 : index
      %c0_20 = arith.constant 0 : index
      %18 = vector.load %arg7[%c0_19, %c0_20] : memref<1x32xf32, #tpu.memory_space<vmem>>, vector<1x32xf32>
      %19 = vector.broadcast %18 : vector<1x32xf32> to vector<8x32xf32>
      %20 = arith.addf %17, %19 : vector<8x32xf32>
      %cst_21 = arith.constant 5.000000e-01 : f32
      %21 = vector.broadcast %cst_21 : f32 to vector<8x32xf32>
      %22 = arith.mulf %21, %20 : vector<8x32xf32>
      %cst_22 = arith.constant 0.707106769 : f32
      %23 = vector.broadcast %cst_22 : f32 to vector<8x32xf32>
      %24 = arith.mulf %20, %23 : vector<8x32xf32>
      %25 = math.erf %24 : vector<8x32xf32>
      %cst_23 = arith.constant 1.000000e+00 : f32
      %26 = vector.broadcast %cst_23 : f32 to vector<8x32xf32>
      %27 = arith.addf %26, %25 : vector<8x32xf32>
      %28 = arith.mulf %22, %27 : vector<8x32xf32>
      %c0_24 = arith.constant 0 : index
      %c0_25 = arith.constant 0 : index
      %29 = vector.load %arg9[%c0_24, %c0_25] : memref<8x32xf32, #tpu.memory_space<vmem>>, vector<8x32xf32>
      %c0_26 = arith.constant 0 : index
      %c0_27 = arith.constant 0 : index
      %30 = vector.load %arg6[%c0_26, %c0_27] : memref<1x32xf32, #tpu.memory_space<vmem>>, vector<1x32xf32>
      %31 = vector.broadcast %30 : vector<1x32xf32> to vector<8x32xf32>
      %32 = arith.addf %29, %31 : vector<8x32xf32>
      %33 = arith.mulf %32, %28 : vector<8x32xf32>
      %c0_28 = arith.constant 0 : index
      %c0_29 = arith.constant 0 : index
      %34 = vector.load %arg8[%c0_28, %c0_29] : memref<8x32xf32, #tpu.memory_space<vmem>>, vector<8x32xf32>
      tpu.vector_store %arg8[%c0_28, %c0_29], %33 {strides = array<i32>} : memref<8x32xf32, #tpu.memory_space<vmem>>, vector<8x32xf32>,
    } else {
    }
    return
  }
  func.func @transform_0(%arg0: i32, %arg1: i32, %arg2: i32) -> (i32, i32) {
    %c0_i32 = arith.constant 0 : i32
    return %arg0, %arg2 : i32, i32
  }
  func.func @transform_1(%arg0: i32, %arg1: i32, %arg2: i32) -> (i32, i32) {
    %c0_i32 = arith.constant 0 : i32
    return %arg2, %arg1 : i32, i32
  }
  func.func @transform_2(%arg0: i32, %arg1: i32, %arg2: i32) -> (i32, i32) {
    %c0_i32 = arith.constant 0 : i32
    return %arg2, %arg1 : i32, i32
  }
  func.func @transform_3(%arg0: i32, %arg1: i32, %arg2: i32) -> (i32, i32) {
    %c0_i32 = arith.constant 0 : i32
    %c0_i32_0 = arith.constant 0 : i32
    return %c0_i32, %arg1 : i32, i32
  }
  func.func @transform_4(%arg0: i32, %arg1: i32, %arg2: i32) -> (i32, i32) {
    %c0_i32 = arith.constant 0 : i32
    %c0_i32_0 = arith.constant 0 : i32
    return %c0_i32, %arg1 : i32, i32
  }
  func.func @transform_5(%arg0: i32, %arg1: i32, %arg2: i32) -> (i32, i32) {
    %c0_i32 = arith.constant 0 : i32
    return %arg0, %arg1 : i32, i32
  }
}

</mosaic_0001>

<bundles_post_ra>
// kernel: tpu_custom_call.1
= control target key start
LH: loop header
LB: loop body
LE: loop exit
PB: predicated region body
PF: predicated region fallthrough
CT: control target
= control target key end

     0   :  { %10 = vsyncpa [#allocation5], 0  ;;  %s1115_s0 = inlined_call_operand.hbm [shape: f32[16,32], index: 0, kind: input, shape index: {}]   ;;  %s1116_s1 = inlined_call_operand.hbm [shape: f32[32,32], index: 1, kind: input, shape index: {}]   ;;  %s1117_s2 = inlined_call_operand.hbm [shape: f32[32,32], index: 2, kind: input, shape index: {}]   ;;  %s1118_s3 = inlined_call_operand.vmem [shape: f32[1,32], index: 3, kind: input, shape index: {}]   ;;  %s1119_s4 = inlined_call_operand.vmem [shape: f32[1,32], index: 4, kind: input, shape index: {}]   ;;  %s1120_s5 = inlined_call_operand.hbm [shape: f32[16,32], index: 5, kind: output, shape index: {}]  }
   0x1   :  { %12 = vsyncpa [#allocation5 + $0x1], 0 }
   0x2   :  { %13 = vsyncpa [#allocation8], 0 }
   0x3   :  { %14 = vsyncpa [#allocation6], 0 }
   0x4   :  { %16 = vsyncpa [#allocation6 + $0x1], 0  ;;  %s954_s18 = smov 0   ;;  %s956_s19 = smov 0  }
   0x5   :  { %s958_s20 = smov 0   ;;  %s960_s21 = smov 0  }
   0x6   :  { %s962_s22 = smov 0   ;;  %s964_s23 = smov 0  }
   0x7 LB: > { %s629_s24 = sadd.s32 4294967295, %s917_s23   ;;  %p631_p0 = scmp.ge.s32.totalorder %s917_s23, 1  ;;  %s917_s23 = sphi %s964_s23, %s22_s23   ;;  %s913_s22 = sphi %s962_s22, %s1130_s22   ;;  %s909_s21 = sphi %s960_s21, %s1129_s21   ;;  %s905_s20 = sphi %s958_s20, %s1128_s20   ;;  %s901_s19 = sphi %s956_s19, %s1127_s19   ;;  %s897_s18 = sphi %s954_s18, %s1126_s18  }
   0x8   : > { %p988_p1 = scmp.eq.s32.totalorder %s629_s24, 0  ;;  %p210_p2 = scmp.lt.s32.totalorder %s917_s23, 3 }
   0x9   : > { %s225_s28 = sshll.u32 %s1116_s1, 4  ;;  %s919_s30 = smov [#allocation7]   ;;  %s226_s28 = int_to_ptr.hbm [resolvable:$true] %s225_s28 }
   0xa   : > { %p996_p3 = pnand %p631_p0, %p210_p2  ;;  %s227_s6 = sshll.u32 %s919_s30, 4  ;;  %s228_s6 = int_to_ptr.vmem [resolvable:$true] %s227_s6 }
   0xb   : > { %p636_p6 = scmp.ge.s32.totalorder %s917_s23, 2  ;;  %s243_s9 = sshll.u32 %s1117_s2, 4  ;;  %s244_s9 = int_to_ptr.hbm [resolvable:$true] %s243_s9 }
   0xc   : > { %p663_p4 = pneg %p996_p3  ;;  %s920_s10 = smov 128  }
   0xd   : > { %s921_s11 = smov 8   ;;  %s922_s12 = smov [#allocation9]  }
   0xe   : > { %p664_p5 = pnand %p663_p4, %p988_p1  ;;  %s245_s13 = sshll.u32 %s922_s12, 4  ;;  %s246_s13 = int_to_ptr.vmem [resolvable:$true] %s245_s13 }
   0xf   : > { %s41_s14 = sadd.s32 1, %s913_s22  ;;  %s630_s15 = sadd.s32 4294967294, %s917_s23  }
  0x10   : > { %666 = dma.hbm_to_vmem [thread:$0]  (!%p664_p5), %s226_s28, 512, %s228_s6, [#allocation8], %s920_s10, %s920_s10, %s921_s11  }
  0x11   : > { %669 = dma.hbm_to_vmem [thread:$0]  (!%p664_p5), %s244_s9, 512, %s246_s13, [#allocation8], %s920_s10, %s920_s10, %s921_s11  }
  0x12   : > { %p43_p7 = scmp.ge.s32.totalorder %s41_s14, 2  ;;  %s50_s16 = sadd.s32 1, %s905_s20 }
  0x13   : > { %p57_p8 = scmp.ne.s32.totalorder %s905_s20, %s901_s19  ;;  %p58_p9 = scmp.eq.s32.totalorder %s917_s23, 0 }
  0x14   : > { %s1132_s14 = smov (%p43_p7, %s41_s14), 0  ;;  %p63_p10 = scmp.ne.s32.totalorder %s901_s19, %s897_s18 }
  0x15   : > { %s45_s17 = ssub.s32 %s913_s22, %s1132_s14  ;;  %p197_p11 = scmp.eq.s32.totalorder %s629_s24, 1 }
  0x16   : > { %p48_p12 = scmp.eq.s32.totalorder %s45_s17, 0  ;;  %p1024_p13 = por %p988_p1, %p63_p10 }
  0x17   : > { %p1028_p0 = por %p197_p11, %p57_p8  ;;  %p203_p2 = scmp.eq.s32.totalorder %s630_s15, 1 }
  0x18   : > { %s1033_s28 = scalar_select %p48_p12, %s905_s20, %s50_s16  }
  0x19   : > { %p59_p4 = por %p58_p9, %p57_p8  ;;  %p1035_p5 = por %p203_p2, %p63_p10 }
  0x1a   : > { %s271_s6 = sand.u32 1, %s905_s20   ;;  %s638_s24 = sshll.u32 %s913_s22, 3 }
  0x1b   : > { %p680_p7 = scmp.lt.s32.totalorder %s917_s23, 2  ;;  %s637_s7 = sshll.u32 %s271_s6, 3 }
  0x1c   : > { %s280_s10 = scalar_lea.hbm %s1115_s0, %s638_s24  ;;  %s275_s12 = scalar_lea.vmem [#allocation4], %s637_s7 }
  0x1d   : > { %s282_s11 = sshll.u32 %s280_s10, 4  ;;  %s284_s13 = sshll.u32 %s275_s12, 4  ;;  %s283_s11 = int_to_ptr.hbm [resolvable:$true] %s282_s11  ;;  %s285_s13 = int_to_ptr.vmem [resolvable:$true] %s284_s13 }
  0x1e   : > { %p671_p11 = pnand %p680_p7, %p59_p4  ;;  %s272_s15 = scalar_lea.sflag [#allocation5], %s271_s6 }
  0x1f   : > { %293 = sbr.rel (%p996_p3) target bundleno = 241 (0xf1), region = 40  ;;  %s1048_s16 = sand.u32 (!%p996_p3), 1, %s901_s19  }
  0x20   : > { %673 = dma.hbm_to_vmem [thread:$0]  (!%p671_p11), %s283_s11, 128, %s285_s13, %s272_s15  }
  0x21   : > { %s640_s17 = sshll.u32 (!%p996_p3), %s1048_s16, 3  ;;  %s296_s24 = scalar_lea.sflag (!%p996_p3), [#allocation5], %s1048_s16 }
  0x22   : > { %s299_s7 = scalar_lea.vmem (!%p996_p3), [#allocation4], %s640_s17 }
  0x24   : > { %884 = dma.done.wait (%p1024_p13), %s296_s24, 128  }
  0x25   : > { %886 = vsyncadd (%p1024_p13), %s296_s24, 4294967168 }
  0x26   : > { %888 = dma.done.wait (%p988_p1), [#allocation8], 1024  }
  0x27   : > { %890 = vsyncadd (%p988_p1), [#allocation8], 4294966272  ;;  %vm355_vm0 = vcmask 261120   ;;  %v923_v0 = vmov 0.0   ;;  %v394_v1 = vld [vmem:[#allocation9 + $0x18] sm:$0xff]  ;;  %v393_v2 = vld [vmem:[#allocation9 + $0x10] sm:$0xff] }
  0x28   : > { %357 = vst.msk [vmem:[#allocation3] sm:$0xff] %vm355_vm0, %v923_v0  ;;  %407 = vmatpush.msra.mxu1 %v394_v1  ;;  %v363_v3 = vld [vmem:[#allocation7 + $0x18] sm:$0xff]  ;;  %v392_v4 = vld [vmem:[#allocation9 + $0x8] sm:$0xff]  ;;  %v362_v5 = vld [vmem:[#allocation7 + $0x10] sm:$0xff]  ;;  %s648_s26 = sshll.u32 %s909_s21, 3  ;;  %s342_s12 = scalar_lea.vmem [#allocation10], %s640_s17 }
  0x29   : > { %356 = vst.msk [vmem:[#allocation2] sm:$0xff] %vm355_vm0, %v923_v0  ;;  %380 = vmatpush.msra.mxu0 %v363_v3  ;;  %v361_v6 = vld [vmem:[#allocation7 + $0x8] sm:$0xff]  ;;  %v391_v7 = vld [vmem:[#allocation9] sm:$0xff]  ;;  %v358_v8 = vld [vmem:[%s299_s7] sm:$0xff]  ;;  %s490_s11 = scalar_lea.hbm %s1120_s5, %s648_s26  ;;  %s492_s13 = sshll.u32 %s342_s12, 4  ;;  %s493_s13 = int_to_ptr.vmem [resolvable:$true] %s492_s13 }
  0x2a   : > { %408 = vmatpush.msra.mxu1 %v393_v2  ;;  %v360_v9 = vld [vmem:[#allocation7] sm:$0xff]  ;;  %s494_s21 = sshll.u32 %s490_s11, 4  ;;  %s479_s15 = scalar_lea.sflag [#allocation6], %s1048_s16  ;;  %s495_s21 = int_to_ptr.hbm [resolvable:$true] %s494_s21 }
  0x2b   : > { %381 = vmatpush.msra.mxu0 %v362_v5  ;;  %v737_v16 = vld [vmem:[%s1119_s4] ss:$0 sm:$0xff]  ;;  %s845_s24 = sshra.s32 %s495_s21, 4  ;;  %s851_s17 = scalar_lea.hbm %s1120_s5, 16  ;;  %s846_s24 = int_to_ptr.hbm [resolvable:$true] %s845_s24 }
  0x2c   : > { %409 = vmatpush.msra.mxu1 %v392_v4  ;;  %v738_v54 = vld [vmem:[%s1118_s3] ss:$0 sm:$0xff]  ;;  %s847_s7 = scalar_lea.hbm %s846_s24, 8  ;;  %p852_p9 = scmp.lt.s32.totalorder %s846_s24, %s1120_s5 }
  0x2d   : > { %382 = vmatpush.msra.mxu0 %v361_v6  ;;  %p848_p1 = scmp.ne.s32.totalorder %s846_s24, %s847_s7  ;;  %p853_p10 = scmp.lt.s32.totalorder %s851_s17, %s847_s7 }
  0x2e   : > { %410 = vmatpush.msra.mxu1 %v391_v7 }
  0x2f   : > { %645 = vmatmul.msk.f32.vlgmr.msra.gmra.mxu1 %vm355_vm0, %v358_v8  ;;  %383 = vmatpush.msra.mxu0 %v360_v9  ;;  %v390_v10 = vld [vmem:[#allocation3] sm:$0xff]  ;;  %p849_p3 = pnand %p848_p1, %p1028_p0  ;;  %p854_p12 = por %p853_p10, %p852_p9 }
  0x30   : > { %644 = vmatmul.msk.f32.vlgmr.msra.gmra.mxu0 %vm355_vm0, %v358_v8  ;;  %v359_v11 = vld [vmem:[#allocation2] sm:$0xff] }
  0x31   : > { %p850_p8 = pneg %p849_p3 }
  0x33   : > { %p855_p13 = pnand %p854_p12, %p850_p8 }
  0xac   : > { %v412_v12 = vpop.f32.mrf.mxu1 }
  0xad   : > { %v415_v13 = vadd.f32 %v412_v12, %v390_v10  ;;  %v385_v14 = vpop.f32.mrf.mxu0 }
  0xae   : > { %v388_v15 = vadd.f32 %v385_v14, %v359_v11 }
  0xaf   : > { %416 = vst.msk [vmem:[#allocation3] sm:$0xff] %vm355_vm0, %v415_v13 }
  0xb0   : > { %389 = vst.msk [vmem:[#allocation2] sm:$0xff] %vm355_vm0, %v388_v15 }
  0xb6   : > { %v420_v17 = vld [vmem:[#allocation3] sm:$0xff] }
  0xb7   : > { %v425_v18 = vadd.f32 %v737_v16, %v420_v17  ;;  %v470_v55 = vld [vmem:[#allocation2] sm:$0xff] }
  0xb8   : > { %v475_v59 = vadd.f32 %v738_v54, %v470_v55 }
  0xb9   : > { %v427_v19 = vmul.f32 0.70710677, %v425_v18  ;;  %v426_v57 = vmul.f32 0.5, %v425_v18 }
  0xbb   : > { %v428_v20 = vmul.f32 %v427_v19, %v427_v19 }
  0xbd   : > { %v429_v21 = vmin.f32 %v428_v20, 16.0 }
  0xbf   : > { %v430_v22 = vmul.f32 2.1237322e-06, %v429_v21  ;;  %v441_v23 = vmul.f32 3.8918573e-05, %v429_v21 }
  0xc1   : > { %v431_v24 = vadd.f32 0.00028619796, %v430_v22  ;;  %v442_v25 = vadd.f32 0.001143296, %v441_v23 }
  0xc3   : > { %v432_v26 = vmul.f32 %v431_v24, %v429_v21  ;;  %v443_v27 = vmul.f32 %v442_v25, %v429_v21 }
  0xc5   : > { %v444_v28 = vadd.f32 0.014752088, %v443_v27  ;;  %v433_v29 = vadd.f32 0.0036580483, %v432_v26 }
  0xc7   : > { %v445_v30 = vmul.f32 %v444_v28, %v429_v21  ;;  %v434_v32 = vmul.f32 %v433_v29, %v429_v21 }
  0xc9   : > { %v446_v31 = vadd.f32 0.112945676, %v445_v30  ;;  %v435_v35 = vadd.f32 0.05243302, %v434_v32 }
  0xcb   : > { %v447_v33 = vmul.f32 %v446_v31, %v429_v21  ;;  %v436_v38 = vmul.f32 %v435_v35, %v429_v21 }
  0xcd   : > { %v448_v34 = vadd.f32 0.4994258, %v447_v33  ;;  %v437_v39 = vadd.f32 0.18741608, %v436_v38 }
  0xcf   : > { %v449_v36 = vmul.f32 %v448_v34, %v429_v21  ;;  %v438_v41 = vmul.f32 %v437_v39, %v429_v21 }
  0xd1   : > { %v450_v37 = vadd.f32 1.0, %v449_v36  ;;  %v439_v45 = vadd.f32 1.1283791, %v438_v41 }
  0xd3   : > { %739 = vrcp.f32 %v450_v37  ;;  %v462_v44 = vand.u32 2147483648, %v450_v37  ;;  %v460_v47 = vand.u32 2147483647, %v450_v37  ;;  %vm456_vm2 = vweird.f32 %v450_v37 }
  0xd4   : > { %v440_v50 = vmul.f32 %v439_v45, %v427_v19 }
  0xd5   : > { %v463_v49 = vor.u32 1.1754944e-38, %v462_v44  ;;  %vm461_vm4 = vcmp.eq.f32.partialorder %v460_v47, 8.507059e+37 }
  0xd9   : > { %v740_v40 = vpop.eup %739 }
  0xda   : > { %v452_v42 = vmul.f32 %v740_v40, %v450_v37  ;;  %vm457_vm1 = vweird.f32 %v740_v40 }
  0xdb   : > { %vm458_vm3 = vmor %vm456_vm2, %vm457_vm1 }
  0xdc   : > { %v453_v43 = vsub.f32 1.0, %v452_v42 }
  0xde   : > { %v454_v46 = vmul.f32 %v740_v40, %v453_v43 }
  0xe0   : > { %v455_v48 = vadd.f32 %v740_v40, %v454_v46 }
  0xe2   : > { %v459_v51 = vsel %vm458_vm3, %v740_v40, %v455_v48 }
  0xe3   : > { %v464_v52 = vsel %vm461_vm4, %v463_v49, %v459_v51 }
  0xe4   : > { %v465_v53 = vmul.f32 %v464_v52, %v440_v50 }
  0xe6   : > { %v646_v56 = vclamps-f32 %v465_v53, 1.0 }
  0xe8   : > { %v468_v58 = vadd.f32 1.0, %v646_v56 }
  0xea   : > { %v469_v60 = vmul.f32 %v468_v58, %v426_v57 }
  0xec   : > { %v476_v61 = vmul.f32 %v475_v59, %v469_v60 }
  0xee   : > { %477 = vst.msk [vmem:[%s342_s12] sm:$0xff] %vm355_vm0, %v476_v61 }
  0xef   : > { %858 = shalt.err (!%p855_p13)
}
  0xf0   : > { %661 = dma.vmem_to_hbm [thread:$0]  (%p1028_p0), %s493_s13, 128, %s495_s21, %s479_s15  }
  0xf1 PF: > { %s506_s16 = sand.u32 1, %s897_s18   ;;  %p675_p2 = pnand %p636_p6, %p1035_p5 }
  0xf2   : > { %s507_s8 = scalar_lea.sflag [#allocation6], %s506_s16 }
  0xf3   : > { %p676_p4 = pneg %p675_p2 }
  0xf5   : > { %892 = dma.done.wait (%p676_p4), %s507_s8, 128  }
  0xf6   : > { %894 = vsyncadd (%p676_p4), %s507_s8, 4294967168  ;;  %s22_s23 = sadd.s32 1, %s917_s23   ;;  %s1126_s18 = smov %s901_s19 }
  0xf7   : > { %p19_p7 = scmp.ge.s32.totalorder %s22_s23, 4   ;;  %s1127_s19 = smov %s905_s20 }
  0xf8   : > { %s1128_s20 = smov %s1033_s28  ;;  %s1129_s21 = smov %s913_s22 }
  0xf9   : > { %s1130_s22 = smov %s1132_s14  ;;  %21 = sbr.rel (!%p19_p7) target bundleno = 7 (0x7), region = 109 }
  0xfe   :  { %513 = vsyncpa [#allocation5], 1 }
  0xff   :  { %515 = vsyncpa [#allocation5 + $0x1], 1 }
 0x100   :  { %516 = vsyncpa [#allocation8], 1 }
 0x101   :  { %517 = vsyncpa [#allocation6], 1 }
 0x102   :  { %519 = vsyncpa [#allocation6 + $0x1], 1 }

</bundles_post_ra>
